<compile_context>
chip_gen: v7x
topology: tpu7x:2x2x1
jax: 0.10.0
libtpu: 0.0.40
codegen_flags: <defaults>
</compile_context>

<pallas_src>
import functools

import jax
import jax.numpy as jnp
from jax.experimental import pallas as pl
from jax.experimental.pallas import tpu as pltpu

LANE = 128   # lane width / padded feature dim
TM = 256     # output-row tile (sublane axis)
TK = 512     # contraction (neighbor) tile; multiple of TM so one round-up works
VMEM_LIMIT = 32 * 1024 * 1024  # safe on v5e/v6e/v7x; tiles use far less


def _round_up(x, m):
    return (x + m - 1) // m * m


# ----------------------------------------------------------------------------
# Kernel 1: XW = X @ W   (per-layer linear transform, row-tiled, bf16 output)
# ----------------------------------------------------------------------------
def _xw_kernel(x_ref, w_ref, o_ref):
    o_ref[...] = jnp.dot(
        x_ref[...], w_ref[...], preferred_element_type=jnp.float32
    ).astype(o_ref.dtype)


def linear_xw(x, w, *, tm=TM):
    n, f = x.shape
    dp = w.shape[1]
    return pl.pallas_call(
        _xw_kernel,
        out_shape=jax.ShapeDtypeStruct((n, dp), jnp.bfloat16),
        grid_spec=pltpu.PrefetchScalarGridSpec(
            num_scalar_prefetch=0,
            grid=(n // tm,),
            in_specs=[
                pl.BlockSpec((tm, f), lambda i: (i, 0)),
                pl.BlockSpec((f, dp), lambda i: (0, 0)),
            ],
            out_specs=pl.BlockSpec((tm, dp), lambda i: (i, 0)),
        ),
        compiler_params=pltpu.CompilerParams(
            dimension_semantics=("parallel",),
            vmem_limit_bytes=VMEM_LIMIT,
        ),
        cost_estimate=pl.CostEstimate(
            flops=2 * n * f * dp,
            transcendentals=0,
            bytes_accessed=n * f * 4 + f * dp * 4 + n * dp * 2,
        ),
    )(x, w)


# ----------------------------------------------------------------------------
# Kernel 2: out = act( A_hat @ XW + b )  -- tiled neighborhood aggregation
# ----------------------------------------------------------------------------
def _agg_kernel(a_ref, xw_ref, b_ref, o_ref, acc_ref, *, activation, apply_act):
    k = pl.program_id(1)

    @pl.when(k == 0)
    def _():
        acc_ref[...] = jnp.zeros_like(acc_ref)

    acc_ref[...] += jnp.dot(
        a_ref[...], xw_ref[...], preferred_element_type=jnp.float32
    )

    @pl.when(k == pl.num_programs(1) - 1)
    def _():
        y = acc_ref[...] + b_ref[...]          # f32 epilogue (fast on v5e too)
        if apply_act:
            if activation == "relu":
                y = jnp.maximum(y, 0.0)
            elif activation == "tanh":
                y = jnp.tanh(y)
            elif activation == "sigmoid":
                y = jax.nn.sigmoid(y)
            elif activation == "leaky_relu":
                y = jnp.where(y >= 0.0, y, 0.1 * y)  # module uses LeakyReLU(0.1)
        o_ref[...] = y.astype(o_ref.dtype)


def gcn_aggregate(a_hat, xw, b, *, activation, apply_act, tm=TM, tk=TK):
    n = a_hat.shape[0]
    dp = xw.shape[1]
    kernel = functools.partial(
        _agg_kernel, activation=activation, apply_act=apply_act
    )
    trans = n * dp if (apply_act and activation in ("tanh", "sigmoid")) else 0
    return pl.pallas_call(
        kernel,
        out_shape=jax.ShapeDtypeStruct((n, dp), jnp.float32),
        grid_spec=pltpu.PrefetchScalarGridSpec(
            num_scalar_prefetch=0,
            grid=(n // tm, n // tk),
            in_specs=[
                pl.BlockSpec((tm, tk), lambda i, k: (i, k)),   # A_hat tile (bf16)
                pl.BlockSpec((tk, dp), lambda i, k: (k, 0)),   # XW slab   (bf16)
                pl.BlockSpec((1, dp), lambda i, k: (0, 0)),    # bias
            ],
            out_specs=pl.BlockSpec((tm, dp), lambda i, k: (i, 0)),
            scratch_shapes=[pltpu.VMEM((tm, dp), jnp.float32)],
        ),
        compiler_params=pltpu.CompilerParams(
            dimension_semantics=("parallel", "arbitrary"),
            vmem_limit_bytes=VMEM_LIMIT,
        ),
        cost_estimate=pl.CostEstimate(
            flops=2 * n * n * dp,
            transcendentals=trans,
            bytes_accessed=n * n * 2 + n * dp * 2 + n * dp * 4,
        ),
    )(a_hat, xw, b)


# ----------------------------------------------------------------------------
# Glue: dense normalized adjacency  A_hat = D^{-1/2} (A + I) D^{-1/2}
# ----------------------------------------------------------------------------
def normalized_adjacency(edge_index, num_nodes, add_self_loops=True):
    src = edge_index[0]
    dst = edge_index[1]
    a = jnp.zeros((num_nodes, num_nodes), jnp.float32).at[dst, src].add(1.0)
    if add_self_loops:
        a = a + jnp.eye(num_nodes, dtype=jnp.float32)
    deg = a.sum(axis=1)
    d_inv_sqrt = jnp.where(deg > 0.0, 1.0 / jnp.sqrt(deg), 0.0)
    return d_inv_sqrt[:, None] * a * d_inv_sqrt[None, :]


def drop_edge(edge_index, keep_ratio: float = 1.0):
    # keep_ratio == 1.0 (module default) keeps every edge -> identity.
    num_keep = int(keep_ratio * edge_index.shape[1])
    return edge_index[:, :num_keep]


# ----------------------------------------------------------------------------
# Parameters (Glorot-uniform on true fan-in/out, zero-padded to 128 lanes)
# ----------------------------------------------------------------------------
def init_gcn_params(key, dim_features, num_classes, num_layers, dim_hidden=32):
    dims = [dim_features] + [dim_hidden] * (num_layers - 1) + [num_classes]
    dp = _round_up(max(dim_hidden, num_classes), LANE)
    params = []
    in_dim = dim_features               # first layer sees raw feature width
    for i in range(num_layers):
        key, sub = jax.random.split(key)
        fan_in, fan_out = dims[i], dims[i + 1]
        limit = jnp.sqrt(6.0 / (fan_in + fan_out))
        w = jax.random.uniform(
            sub, (fan_in, fan_out), jnp.float32, minval=-limit, maxval=limit
        )
        w_pad = jnp.zeros((in_dim, dp), jnp.float32).at[:fan_in, :fan_out].set(w)
        b_pad = jnp.zeros((1, dp), jnp.float32)
        params.append((w_pad, b_pad))
        in_dim = dp                     # later layers consume lane-padded acts
    return params


# ----------------------------------------------------------------------------
# GCNNodeClassifier forward
# ----------------------------------------------------------------------------
def gcn_node_classifier_forward(
    params,
    x,
    edge_index,
    *,
    num_classes,
    add_self_loops=True,
    use_pairnorm=False,
    drop_edge_ratio=1.0,
    activation="relu",
):
    num_nodes = x.shape[0]
    n_pad = _round_up(max(num_nodes, TK), TK)

    # drop_edge(keep_ratio=1.0) is the identity, so build + normalize the
    # adjacency ONCE, pad to tile multiples, and store bf16 in HBM.
    edges = drop_edge(edge_index, drop_edge_ratio)
    a_hat = normalized_adjacency(edges, num_nodes, add_self_loops)
    a_hat = (
        jnp.zeros((n_pad, n_pad), jnp.bfloat16)
        .at[:num_nodes, :num_nodes]
        .set(a_hat.astype(jnp.bfloat16))
    )
    x = jnp.zeros((n_pad, x.shape[1]), jnp.float32).at[:num_nodes].set(x)

    for li, (w, b) in enumerate(params):
        is_last = li == len(params) - 1
        xw = linear_xw(x, w)                                   # (n_pad, 128) bf16
        x = gcn_aggregate(
            a_hat, xw, b, activation=activation, apply_act=not is_last
        )                                                      # (n_pad, 128) f32
        # TODO(synk): PairNorm not implemented (use_pairnorm=False default).

    return x[:num_nodes, :num_classes]


# ----------------------------------------------------------------------------
if __name__ == "__main__":
    key = jax.random.PRNGKey(0)

    num_nodes = 64
    dim_features = 16
    num_classes = 8
    num_layers = 3          # 2 hidden GCNConv + final GCNConv
    num_edges = 256

    k_feat, k_src, k_dst, k_param = jax.random.split(key, 4)
    x = jax.random.normal(k_feat, (num_nodes, dim_features), jnp.float32)
    src = jax.random.randint(k_src, (num_edges,), 0, num_nodes, jnp.int32)
    dst = jax.random.randint(k_dst, (num_edges,), 0, num_nodes, jnp.int32)
    edge_index = jnp.stack([src, dst], axis=0)  # (2, E)

    params = init_gcn_params(k_param, dim_features, num_classes, num_layers)

    out = gcn_node_classifier_forward(
        params,
        x,
        edge_index,
        num_classes=num_classes,
        add_self_loops=True,
        activation="relu",
    )
    out = jax.block_until_ready(out)
    assert out.shape == (num_nodes, num_classes)
    assert jnp.all(jnp.isfinite(out))
    print("KERNEL_OK")
</pallas_src>

<mosaic_0001>
module attributes {stable_mosaic.version = 11 : i64} {
  func.func @_xw_kernel(%arg0: i32, %arg1: memref<256x16xf32, #tpu.memory_space<vmem>>, %arg2: memref<16x128xf32, #tpu.memory_space<vmem>>, %arg3: memref<256x128xbf16, #tpu.memory_space<vmem>>) attributes {dimension_semantics = [#tpu.dimension_semantics<parallel>], iteration_bounds = array<i64: 2>, scalar_prefetch = 0 : i64, scratch_operands = 0 : i64, tpu.core_type = #tpu.core_type<tc>, window_params = [{transform_indices = @transform_0, window_bounds = array<i64: 256, 16>}, {pipeline_mode = #tpu.pipeline_mode<synchronous>, transform_indices = @transform_1, window_bounds = array<i64: 16, 128>}, {transform_indices = @transform_2, window_bounds = array<i64: 256, 128>}]} {
    %c0 = arith.constant 0 : index
    %c0_0 = arith.constant 0 : index
    %0 = vector.load %arg1[%c0, %c0_0] : memref<256x16xf32, #tpu.memory_space<vmem>>, vector<256x16xf32>
    %c0_1 = arith.constant 0 : index
    %c0_2 = arith.constant 0 : index
    %1 = vector.load %arg2[%c0_1, %c0_2] : memref<16x128xf32, #tpu.memory_space<vmem>>, vector<16x128xf32>
    %cst = arith.constant dense<0.000000e+00> : vector<256x128xf32>
    %2 = tpu.matmul %0, %1, %cst {dimension_numbers = #tpu.dot_dimension_numbers<[1], [0], [0], [1], [0, 0, 1, 1], [], []>} : vector<256x16xf32>, vector<16x128xf32>, vector<256x128xf32> -> vector<256x128xf32>
    %3 = arith.truncf %2 : vector<256x128xf32> to vector<256x128xbf16>
    %c0_3 = arith.constant 0 : index
    %c0_4 = arith.constant 0 : index
    %4 = vector.load %arg3[%c0_3, %c0_4] : memref<256x128xbf16, #tpu.memory_space<vmem>>, vector<256x128xbf16>
    tpu.vector_store %arg3[%c0_3, %c0_4], %3 {strides = array<i32>} : memref<256x128xbf16, #tpu.memory_space<vmem>>, vector<256x128xbf16>,
    return
  }
  func.func @transform_0(%arg0: i32) -> (i32, i32) {
    %c0_i32 = arith.constant 0 : i32
    %c0_i32_0 = arith.constant 0 : i32
    return %arg0, %c0_i32 : i32, i32
  }
  func.func @transform_1(%arg0: i32) -> (i32, i32) {
    %c0_i32 = arith.constant 0 : i32
    %c0_i32_0 = arith.constant 0 : i32
    %c0_i32_1 = arith.constant 0 : i32
    return %c0_i32, %c0_i32_0 : i32, i32
  }
  func.func @transform_2(%arg0: i32) -> (i32, i32) {
    %c0_i32 = arith.constant 0 : i32
    %c0_i32_0 = arith.constant 0 : i32
    return %arg0, %c0_i32 : i32, i32
  }
}

</mosaic_0001>

<bundles_post_ra>
// kernel: tpu_custom_call.1
= control target key start
LH: loop header
LB: loop body
LE: loop exit
PB: predicated region body
PF: predicated region fallthrough
CT: control target
= control target key end

     0   :  { %7 = vsyncpa [#allocation3], 0  ;;  %s1353_s0 = inlined_call_operand.vmem [shape: f32[512,16], index: 0, kind: input, shape index: {}]   ;;  %s1354_s1 = inlined_call_operand.vmem [shape: f32[16,128], index: 1, kind: input, shape index: {}]   ;;  %s1355_s2 = inlined_call_operand.hbm [shape: bf16[512,128], index: 2, kind: output, shape index: {}]  }
   0x1   :  { %9 = vsyncpa [#allocation3 + $0x1], 0  ;;  %s1156_s9 = smov 0   ;;  %s1158_s10 = smov 0  }
   0x2   :  { %s1160_s11 = smov 0   ;;  %s1162_s12 = smov 0  }
   0x3 LB: > { %s1177_s13 = sadd.s32 4294967295, %s1136_s12   ;;  %s737_s14 = sadd.s32 4294967294, %s1136_s12   ;;  %s1136_s12 = sphi %s1162_s12, %s1361_s12   ;;  %s1132_s11 = sphi %s1160_s11, %s1360_s11   ;;  %s1128_s10 = sphi %s1158_s10, %s1359_s10   ;;  %s1124_s9 = sphi %s1156_s9, %s1358_s9  }
   0x4   : > { %s1181_s15 = sadd.s32 1, %s1136_s12   ;;  %s69_s16 = sadd.s32 1, %s1132_s11 }
   0x5   : > { %s66_s17 = ssub.s32 %s1136_s12, %s1181_s15  ;;  %p79_p0 = scmp.ne.s32.totalorder %s1132_s11, %s1128_s10 }
   0x6   : > { %p67_p1 = scmp.eq.s32.totalorder %s66_s17, 0  ;;  %p80_p2 = scmp.eq.s32.totalorder %s1177_s13, 1 }
   0x7   : > { %p85_p3 = scmp.ne.s32.totalorder %s1128_s10, %s1124_s9  ;;  %p86_p4 = scmp.eq.s32.totalorder %s737_s14, 1 }
   0x8   : > { %s1192_s18 = scalar_select %p67_p1, %s1132_s11, %s69_s16  }
   0x9   : > { %p1194_p5 = por %p80_p2, %p79_p0  ;;  %p1198_p6 = por %p86_p4, %p85_p3 }
   0xa   : > { %p740_p7 = scmp.ge.s32.totalorder %s1136_s12, 1  ;;  %p116_p8 = scmp.lt.s32.totalorder %s1136_s12, 3 }
   0xc   : > { %p117_p9 = pnand %p740_p7, %p116_p8 }
   0xd   : > { %v177_v0 = vld [vmem:[%s1354_s1] sm:$0xff] (!%p117_p9)  ;;  %v178_v1 = vld [vmem:[%s1354_s1 + $0x8] sm:$0xff] (!%p117_p9)  ;;  %s742_s25 = sshll.u32 (!%p117_p9), %s1177_s13, 5  ;;  %vm179_vm0 = vcmask (!%p117_p9), 130048   ;;  %s135_s30 = sand.u32 (!%p117_p9), 1, %s1128_s10  }
   0xe   : > { %120 = sbr.rel (%p117_p9) target bundleno = 285 (0x11d), region = 28  ;;  %v1027_v2 = vpack.c.bf16 (!%p117_p9), %v178_v1, %v177_v0  ;;  %p139_p10 = scmp.lt.s32.totalorder (!%p117_p9), %s742_s25, 63 }
   0xf   : > { %s741_s3 = sshll.u32 (!%p117_p9), %s135_s30, 7  ;;  %s845_s5 = sshll.u32 (!%p117_p9), %s1177_s13, 11 }
  0x10   : > { %1028 = vmatprep.subr.bf16.mxu0 (!%p117_p9), %v1027_v2  ;;  %1031 = vmatprep.subr.bf16.mxu1 (!%p117_p9), %v1027_v2  ;;  %s1283_s4 = scalar_lea.vmem (!%p117_p9), [#allocation2], %s741_s3  ;;  %s1304_s14 = scalar_lea.hbm (!%p117_p9), %s1355_s2, %s845_s5 }
  0x11   : > { %1030 = vmatpush3.bf16.msra.mxu0 (!%p117_p9), %v1027_v2  ;;  %1032 = vmatpush3.bf16.msra.mxu1 (!%p117_p9), %v1027_v2  ;;  %s675_s6 = sshll.u32 (!%p117_p9), %s1283_s4, 4  ;;  %s1312_s13 = scalar_lea.sflag (!%p117_p9), [#allocation3], %s135_s30  ;;  %s1306_s6 = int_to_ptr.vmem [resolvable:$true] %s675_s6 }
  0x12   : > { %s1074_s16 = scalar_lea.vmem (!%p117_p9), %s1306_s6, 2048  ;;  %s1138_s17 = smov (!%p117_p9), [#allocation2]  }
  0x13   : > { %p1075_p11 = scmp.ne.s32.totalorder (!%p117_p9), %s1306_s6, %s1074_s16  ;;  %s1078_s21 = sshll.u32 (!%p117_p9), %s1138_s17, 4  ;;  %s1079_s21 = int_to_ptr.vmem [resolvable:$false] %s1078_s21 }
  0x14   : > { %s1080_s22 = scalar_lea.vmem (!%p117_p9), %s1079_s21, 4096  ;;  %p1081_p0 = scmp.lt.s32.totalorder (!%p117_p9), %s1306_s6, %s1079_s21 }
  0x15   : > { %s1363_s25 = smov (!%p139_p10, %s742_s25), 63  ;;  %p1076_p12 = pnand %p1075_p11, %p1194_p5 }
  0x16   : > { %s743_s26 = sshll.u32 %s1363_s25, 3  ;;  %p1082_p1 = scmp.lt.s32.totalorder %s1080_s22, %s1074_s16 }
  0x17   : > { %s1214_s29 = scalar_lea.vmem %s1353_s0, %s743_s26  ;;  %p1077_p13 = pneg %p1076_p12 }
  0x18   : > { %v145_v3 = vld [vmem:[%s1214_s29] sm:$0xff]  ;;  %v146_v5 = vld [vmem:[%s1214_s29 + $0x8] sm:$0xff]  ;;  %v147_v7 = vld [vmem:[%s1214_s29 + $0x10] sm:$0xff]  ;;  %p1083_p2 = por %p1082_p1, %p1081_p0 }
  0x19   : > { %v161_v4 = vld [vmem:[%s1214_s29 + $0x80] sm:$0xff]  ;;  %979 = vmatprep.mubr.msk.f32.mxu0 %vm179_vm0, %v145_v3  ;;  %v162_v6 = vld [vmem:[%s1214_s29 + $0x88] sm:$0xff]  ;;  %v163_v8 = vld [vmem:[%s1214_s29 + $0x90] sm:$0xff] }
  0x1a   : > { %1003 = vmatprep.mubr.msk.f32.mxu1 %vm179_vm0, %v161_v4  ;;  %980 = vmatmul.mubr.msk.f32.vlgmr.msra.gmra.mrb[0].mxu0 %vm179_vm0, %v146_v5  ;;  %v148_v9 = vld [vmem:[%s1214_s29 + $0x18] sm:$0xff]  ;;  %v149_v11 = vld [vmem:[%s1214_s29 + $0x20] sm:$0xff]  ;;  %v150_v13 = vld [vmem:[%s1214_s29 + $0x28] sm:$0xff]  ;;  %p1084_p3 = pnand %p1083_p2, %p1077_p13 }
  0x1b   : > { %1004 = vmatmul.mubr.msk.f32.vlgmr.msra.gmra.mrb[0].mxu1 %vm179_vm0, %v162_v6  ;;  %982 = vmatprep.mubr.msk.f32.mxu0 %vm179_vm0, %v147_v7  ;;  %v164_v10 = vld [vmem:[%s1214_s29 + $0x98] sm:$0xff]  ;;  %v165_v12 = vld [vmem:[%s1214_s29 + $0xa0] sm:$0xff]  ;;  %v166_v14 = vld [vmem:[%s1214_s29 + $0xa8] sm:$0xff] }
  0x1c   : > { %1006 = vmatprep.mubr.msk.f32.mxu1 %vm179_vm0, %v163_v8  ;;  %v151_v15 = vld [vmem:[%s1214_s29 + $0x30] sm:$0xff]  ;;  %v152_v17 = vld [vmem:[%s1214_s29 + $0x38] sm:$0xff]  ;;  %v153_v19 = vld [vmem:[%s1214_s29 + $0x40] sm:$0xff] }
  0x1d   : > { %v167_v16 = vld [vmem:[%s1214_s29 + $0xb0] sm:$0xff]  ;;  %v168_v18 = vld [vmem:[%s1214_s29 + $0xb8] sm:$0xff]  ;;  %v169_v20 = vld [vmem:[%s1214_s29 + $0xc0] sm:$0xff] }
  0x1e   : > { %983 = vmatmul.mubr.msk.f32.gmra.mrb[2].mxu0 %vm179_vm0, %v148_v9  ;;  %v154_v21 = vld [vmem:[%s1214_s29 + $0x48] sm:$0xff]  ;;  %v155_v23 = vld [vmem:[%s1214_s29 + $0x50] sm:$0xff]  ;;  %v156_v25 = vld [vmem:[%s1214_s29 + $0x58] sm:$0xff] }
  0x1f   : > { %1007 = vmatmul.mubr.msk.f32.gmra.mrb[2].mxu1 %vm179_vm0, %v164_v10  ;;  %985 = vmatprep.mubr.msk.f32.mxu0 %vm179_vm0, %v149_v11  ;;  %v170_v22 = vld [vmem:[%s1214_s29 + $0xc8] sm:$0xff]  ;;  %v171_v24 = vld [vmem:[%s1214_s29 + $0xd0] sm:$0xff]  ;;  %v172_v26 = vld [vmem:[%s1214_s29 + $0xd8] sm:$0xff] }
  0x20   : > { %1009 = vmatprep.mubr.msk.f32.mxu1 %vm179_vm0, %v165_v12  ;;  %v157_v27 = vld [vmem:[%s1214_s29 + $0x60] sm:$0xff]  ;;  %v158_v29 = vld [vmem:[%s1214_s29 + $0x68] sm:$0xff]  ;;  %v159_v31 = vld [vmem:[%s1214_s29 + $0x70] sm:$0xff] }
  0x21   : > { %v173_v28 = vld [vmem:[%s1214_s29 + $0xe0] sm:$0xff]  ;;  %v174_v30 = vld [vmem:[%s1214_s29 + $0xe8] sm:$0xff]  ;;  %v175_v32 = vld [vmem:[%s1214_s29 + $0xf0] sm:$0xff] }
  0x22   : > { %986 = vmatmul.mubr.msk.f32.gmra.mrb[4].mxu0 %vm179_vm0, %v150_v13  ;;  %v160_v33 = vld [vmem:[%s1214_s29 + $0x78] sm:$0xff] }
  0x23   : > { %1010 = vmatmul.mubr.msk.f32.gmra.mrb[4].mxu1 %vm179_vm0, %v166_v14  ;;  %988 = vmatprep.mubr.msk.f32.mxu0 %vm179_vm0, %v151_v15  ;;  %v176_v34 = vld [vmem:[%s1214_s29 + $0xf8] sm:$0xff] }
  0x24   : > { %1012 = vmatprep.mubr.msk.f32.mxu1 %vm179_vm0, %v167_v16 }
  0x26   : > { %989 = vmatmul.mubr.msk.f32.gmra.mrb[6].mxu0 %vm179_vm0, %v152_v17 }
  0x27   : > { %1013 = vmatmul.mubr.msk.f32.gmra.mrb[6].mxu1 %vm179_vm0, %v168_v18  ;;  %991 = vmatprep.mubr.msk.f32.mxu0 %vm179_vm0, %v153_v19 }
  0x28   : > { %1015 = vmatprep.mubr.msk.f32.mxu1 %vm179_vm0, %v169_v20 }
  0x2a   : > { %992 = vmatmul.mubr.msk.f32.gmra.mrb[8].mxu0 %vm179_vm0, %v154_v21 }
  0x2b   : > { %1016 = vmatmul.mubr.msk.f32.gmra.mrb[8].mxu1 %vm179_vm0, %v170_v22  ;;  %994 = vmatprep.mubr.msk.f32.mxu0 %vm179_vm0, %v155_v23 }
  0x2c   : > { %1018 = vmatprep.mubr.msk.f32.mxu1 %vm179_vm0, %v171_v24 }
  0x2e   : > { %995 = vmatmul.mubr.msk.f32.gmra.mrb[10].mxu0 %vm179_vm0, %v156_v25 }
  0x2f   : > { %1019 = vmatmul.mubr.msk.f32.gmra.mrb[10].mxu1 %vm179_vm0, %v172_v26  ;;  %997 = vmatprep.mubr.msk.f32.mxu0 %vm179_vm0, %v157_v27 }
  0x30   : > { %1021 = vmatprep.mubr.msk.f32.mxu1 %vm179_vm0, %v173_v28 }
  0x32   : > { %998 = vmatmul.mubr.msk.f32.gmra.mrb[12].mxu0 %vm179_vm0, %v158_v29 }
  0x33   : > { %1022 = vmatmul.mubr.msk.f32.gmra.mrb[12].mxu1 %vm179_vm0, %v174_v30  ;;  %1000 = vmatprep.mubr.msk.f32.mxu0 %vm179_vm0, %v159_v31 }
  0x34   : > { %1024 = vmatprep.mubr.msk.f32.mxu1 %vm179_vm0, %v175_v32 }
  0x36   : > { %1001 = vmatmul.mubr.msk.f32.gmra.mrb[14].mxu0 %vm179_vm0, %v160_v33 }
  0x37   : > { %1025 = vmatmul.mubr.msk.f32.gmra.mrb[14].mxu1 %vm179_vm0, %v176_v34 }
  0xed   : > { %v981_v35 = vpop.f32.mrb[0].mxu0 }
  0xee   : > { %v1005_v36 = vpop.f32.mrb[0].mxu1  ;;  %v342_v37 = vpop.f32.mrb[1].mxu0 }
  0xef   : > { %v422_v38 = vpop.f32.mrb[1].mxu1  ;;  %v849_v39 = vpack.c.bf16 %v981_v35, %v342_v37 }
  0xf0   : > { %v889_v40 = vpack.c.bf16 %v1005_v36, %v422_v38 }
  0xf1   : > { %850 = vst [vmem:[%s1283_s4] sm:$0xff] %v849_v39   ;;  %v984_v41 = vpop.f32.mrb[2].mxu0 }
  0xf2   : > { %933 = vst [vmem:[%s1283_s4 + $0x40] sm:$0xff] %v889_v40   ;;  %v1008_v42 = vpop.f32.mrb[2].mxu1  ;;  %v352_v43 = vpop.f32.mrb[3].mxu0 }
  0xf3   : > { %v432_v44 = vpop.f32.mrb[3].mxu1  ;;  %v854_v45 = vpack.c.bf16 %v984_v41, %v352_v43 }
  0xf4   : > { %v894_v46 = vpack.c.bf16 %v1008_v42, %v432_v44 }
  0xf5   : > { %926 = vst [vmem:[%s1283_s4 + $0x8] sm:$0xff] %v854_v45   ;;  %v987_v47 = vpop.f32.mrb[4].mxu0 }
  0xf6   : > { %934 = vst [vmem:[%s1283_s4 + $0x48] sm:$0xff] %v894_v46   ;;  %v1011_v48 = vpop.f32.mrb[4].mxu1  ;;  %v362_v49 = vpop.f32.mrb[5].mxu0 }
  0xf7   : > { %v442_v50 = vpop.f32.mrb[5].mxu1  ;;  %v859_v51 = vpack.c.bf16 %v987_v47, %v362_v49 }
  0xf8   : > { %v899_v52 = vpack.c.bf16 %v1011_v48, %v442_v50 }
  0xf9   : > { %927 = vst [vmem:[%s1283_s4 + $0x10] sm:$0xff] %v859_v51   ;;  %v990_v53 = vpop.f32.mrb[6].mxu0 }
  0xfa   : > { %935 = vst [vmem:[%s1283_s4 + $0x50] sm:$0xff] %v899_v52   ;;  %v1014_v54 = vpop.f32.mrb[6].mxu1  ;;  %v372_v55 = vpop.f32.mrb[7].mxu0 }
  0xfb   : > { %v452_v56 = vpop.f32.mrb[7].mxu1  ;;  %v864_v57 = vpack.c.bf16 %v990_v53, %v372_v55 }
  0xfc   : > { %v904_v58 = vpack.c.bf16 %v1014_v54, %v452_v56 }
  0xfd   : > { %928 = vst [vmem:[%s1283_s4 + $0x18] sm:$0xff] %v864_v57   ;;  %v993_v59 = vpop.f32.mrb[8].mxu0 }
  0xfe   : > { %936 = vst [vmem:[%s1283_s4 + $0x58] sm:$0xff] %v904_v58   ;;  %v1017_v60 = vpop.f32.mrb[8].mxu1  ;;  %v382_v61 = vpop.f32.mrb[9].mxu0 }
  0xff   : > { %v462_v62 = vpop.f32.mrb[9].mxu1  ;;  %v869_v63 = vpack.c.bf16 %v993_v59, %v382_v61 }
 0x100   : > { %v909_v0 = vpack.c.bf16 %v1017_v60, %v462_v62 }
 0x101   : > { %929 = vst [vmem:[%s1283_s4 + $0x20] sm:$0xff] %v869_v63   ;;  %v996_v1 = vpop.f32.mrb[10].mxu0 }
 0x102   : > { %937 = vst [vmem:[%s1283_s4 + $0x60] sm:$0xff] %v909_v0   ;;  %v1020_v2 = vpop.f32.mrb[10].mxu1  ;;  %v392_v3 = vpop.f32.mrb[11].mxu0 }
 0x103   : > { %v472_v4 = vpop.f32.mrb[11].mxu1  ;;  %v874_v5 = vpack.c.bf16 %v996_v1, %v392_v3 }
 0x104   : > { %v914_v6 = vpack.c.bf16 %v1020_v2, %v472_v4 }
 0x105   : > { %930 = vst [vmem:[%s1283_s4 + $0x28] sm:$0xff] %v874_v5   ;;  %v999_v7 = vpop.f32.mrb[12].mxu0 }
 0x106   : > { %938 = vst [vmem:[%s1283_s4 + $0x68] sm:$0xff] %v914_v6   ;;  %v1023_v8 = vpop.f32.mrb[12].mxu1  ;;  %v402_v9 = vpop.f32.mrb[13].mxu0 }
 0x107   : > { %v482_v10 = vpop.f32.mrb[13].mxu1  ;;  %v879_v11 = vpack.c.bf16 %v999_v7, %v402_v9 }
 0x108   : > { %v919_v12 = vpack.c.bf16 %v1023_v8, %v482_v10 }
 0x109   : > { %931 = vst [vmem:[%s1283_s4 + $0x30] sm:$0xff] %v879_v11   ;;  %v1002_v13 = vpop.f32.mrb[14].mxu0 }
 0x10a   : > { %939 = vst [vmem:[%s1283_s4 + $0x70] sm:$0xff] %v919_v12   ;;  %v1026_v14 = vpop.f32.mrb[14].mxu1  ;;  %v412_v15 = vpop.f32.mrb[15].mxu0 }
 0x10b   : > { %v492_v16 = vpop.f32.mrb[15].mxu1  ;;  %v884_v17 = vpack.c.bf16 %v1002_v13, %v412_v15 }
 0x10c   : > { %v924_v18 = vpack.c.bf16 %v1026_v14, %v492_v16 }
 0x10d   : > { %932 = vst [vmem:[%s1283_s4 + $0x38] sm:$0xff] %v884_v17  }
 0x10e   : > { %940 = vst [vmem:[%s1283_s4 + $0x78] sm:$0xff] %v924_v18  }
 0x10f   : > { %1087 = shalt.err (!%p1084_p3)
}
 0x110   : > { %s1088_s23 = scalar_lea.hbm %s1304_s14, 2048  ;;  %s1092_s26 = scalar_lea.hbm %s1355_s2, 4096 }
 0x111   : > { %p1089_p4 = scmp.ne.s32.totalorder %s1304_s14, %s1088_s23  ;;  %p1093_p9 = scmp.lt.u32.totalorder %s1304_s14, %s1355_s2 }
 0x112   : > { %p1094_p10 = scmp.lt.u32.totalorder %s1092_s26, %s1088_s23  ;;  %p1096_p12 = scmp.lt.u32.totalorder %s1088_s23, %s1304_s14 }
 0x113   : > { %p1090_p7 = pnand %p1089_p4, %p1194_p5 }
 0x114   : > { %p1095_p11 = por %p1094_p10, %p1093_p9 }
 0x115   : > { %p1091_p8 = pneg %p1090_p7 }
 0x116   : > { %p1097_p13 = por %p1096_p12, %p1095_p11 }
 0x118   : > { %p1098_p0 = pnand %p1097_p13, %p1091_p8 }
 0x11a   : > { %1101 = shalt.err (!%p1098_p0)
}
 0x11b   : > { %s1139_s29 = smov 64   ;;  %s1140_s30 = smov 4  }
 0x11c   : > { %1033 = dma.vmem_to_hbm [thread:$0]  (%p1194_p5), %s1306_s6, 2048, %s1304_s14, %s1312_s13, %s1139_s29, %s1139_s29, %s1140_s30  }
 0x11d PF: > { %p1039_p1 = scmp.ge.s32.totalorder %s1136_s12, 2  ;;  %s690_s3 = sand.u32 1, %s1124_s9  }
 0x11e   : > { %s691_s4 = scalar_lea.sflag [#allocation3], %s690_s3 }
 0x11f   : > { %p1036_p2 = pnand %p1039_p1, %p1198_p6 }
 0x121   : > { %1119 = dma.done.wait (!%p1036_p2), %s691_s4, 2048  }
 0x122   : > { %1121 = vsyncadd (!%p1036_p2), %s691_s4, 4294965248  ;;  %p12_p3 = scmp.ge.s32.totalorder %s1181_s15, 4   ;;  %s1358_s9 = smov %s1128_s10 }
 0x123   : > { %s1359_s10 = smov %s1132_s11  ;;  %s1360_s11 = smov %s1192_s18 }
 0x124   : > { %s1361_s12 = smov %s1181_s15  ;;  %14 = sbr.rel (!%p12_p3) target bundleno = 3 (0x3), region = 63 }
 0x12b   :  { %696 = vsyncpa [#allocation3], 1 }
 0x12c   :  { %698 = vsyncpa [#allocation3 + $0x1], 1 }

</bundles_post_ra>
